<compile_context>
chip_gen: v7x
topology: tpu7x:2x2x1
jax: 0.10.0
libtpu: 0.0.40
codegen_flags: <defaults>
</compile_context>

<pallas_src>
import functools

import jax
import jax.numpy as jnp
from jax.experimental import pallas as pl
from jax.experimental.pallas import tpu as pltpu


def _attn_kernel(xq_ref, xkv_ref, wq_ref, bq_ref, wkv_ref, bkv_ref,
                 wo_ref, bo_ref, o_ref, m_sc, l_sc, acc_sc, *, scaling, e_dim):
    ki = pl.program_id(2)
    cdt = wq_ref.dtype   # MXU operand dtype (f32 or bf16); accumulation is f32.

    @pl.when(ki == 0)
    def _():
        m_sc[...] = jnp.full_like(m_sc, -jnp.inf)
        l_sc[...] = jnp.zeros_like(l_sc)
        acc_sc[...] = jnp.zeros_like(acc_sc)

    xq = xq_ref[...]                                    # (Bb, Tq, E)
    xkv = xkv_ref[...]                                  # (Bb, Tk, E)

    # Q projection for this query tile.
    q = jax.lax.dot_general(
        xq, wq_ref[...], dimension_numbers=(((2,), (0,)), ((), ())),
        preferred_element_type=jnp.float32) + bq_ref[...]          # (Bb, Tq, E) f32

    # Fused K/V projection for this key/value tile (V columns pre-scaled by E**-0.5).
    kv = jax.lax.dot_general(
        xkv, wkv_ref[...], dimension_numbers=(((2,), (0,)), ((), ())),
        preferred_element_type=jnp.float32) + bkv_ref[...]         # (Bb, Tk, 2E) f32
    k = kv[:, :, :e_dim]
    v = kv[:, :, e_dim:]

    # Scores: batched contraction over E — no explicit K transpose (no XLU relayout).
    s = jax.lax.dot_general(
        q.astype(cdt), k.astype(cdt),
        dimension_numbers=(((2,), (2,)), ((0,), (0,))),
        preferred_element_type=jnp.float32) * scaling              # (Bb, Tq, Tk) f32

    # Online softmax update (all f32 elementwise math).
    m_prev = m_sc[...]
    m_new = jnp.maximum(m_prev, jnp.max(s, axis=-1, keepdims=True))
    alpha = jnp.exp(m_prev - m_new)
    p = jnp.exp(s - m_new)
    l_sc[...] = alpha * l_sc[...] + jnp.sum(p, axis=-1, keepdims=True)
    pv = jax.lax.dot_general(
        p.astype(cdt), v.astype(cdt),
        dimension_numbers=(((2,), (1,)), ((0,), (0,))),
        preferred_element_type=jnp.float32)                        # (Bb, Tq, E) f32
    acc_sc[...] = alpha * acc_sc[...] + pv
    m_sc[...] = m_new

    @pl.when(ki == pl.num_programs(2) - 1)
    def _():
        attn_out = acc_sc[...] * pl.reciprocal(l_sc[...], approx=True)  # (Bb, Tq, E)
        out = jax.lax.dot_general(
            attn_out.astype(cdt), wo_ref[...],
            dimension_numbers=(((2,), (0,)), ((), ())),
            preferred_element_type=jnp.float32) + bo_ref[...]      # (Bb, Tq, Cp) f32
        o_ref[...] = out.astype(o_ref.dtype)


def _choose_tiles(B, S):
    """Pick (batch_block, q_tile, k_tile)."""
    if S <= 128 or S % 128 != 0:
        # Whole-sequence path; fold all batches into one grid step when tiny.
        bb = B if B * S <= 2048 else 1
        return bb, S, S
    # Flash-style tiling for long sequences (caps VMEM; v7x-friendly).
    tq = 128
    tk = 256 if S % 256 == 0 else 128
    return 1, tq, tk


def scaled_dot_product_attention(x, wq, bq, wk, bk, wv, bv, wo, bo,
                                 *, compute_dtype=None):
    """x: (B, S, E).  w*: PyTorch-layout (out, in) Linear weights, b*: (out,).

    compute_dtype: MXU operand dtype (e.g. jnp.bfloat16 on v6e/v7x).  Defaults
    to x.dtype.  Accumulation and all softmax math remain float32.
    """
    B, S, E = x.shape
    C = wo.shape[0]
    cdt = jnp.dtype(compute_dtype if compute_dtype is not None else x.dtype)
    scaling = float(E) ** -0.5
    inv_sqrt_e = float(E) ** -0.5   # post-softmax 1/sqrt(E), folded into V below.

    # Glue (trace-time, runs once): transpose to (in, out), fuse K&V weights,
    # fold 1/sqrt(E) into V, cast weights to the compute dtype, pad the output
    # projection to a lane-dense width.
    wq_t = wq.T.astype(cdt)                                            # (E, E)
    wkv = jnp.concatenate([wk.T, wv.T * inv_sqrt_e], axis=1).astype(cdt)   # (E, 2E)
    bq2 = bq.reshape(1, E).astype(jnp.float32)
    bkv = jnp.concatenate([bk, bv * inv_sqrt_e]).reshape(1, 2 * E).astype(jnp.float32)

    Cp = ((C + 127) // 128) * 128                                      # lane-dense
    wo_p = jnp.zeros((E, Cp), cdt).at[:, :C].set(wo.T.astype(cdt))
    bo_p = jnp.zeros((1, Cp), jnp.float32).at[:, :C].set(bo.astype(jnp.float32))

    xc = x.astype(cdt)

    Bb, Tq, Tk = _choose_tiles(B, S)
    grid = (B // Bb, S // Tq, S // Tk)

    kernel = functools.partial(_attn_kernel, scaling=scaling, e_dim=E)

    itemsize_in = jnp.dtype(cdt).itemsize
    flops = int(3 * 2 * B * S * E * E          # Q, K, V projections
                + 2 * 2 * B * S * S * E        # Q K^T and P V
                + 2 * B * S * E * Cp)          # output projection
    transcendentals = int(B * S * S)           # exp in softmax
    bytes_accessed = int(
        2 * B * S * E * itemsize_in            # x streamed as Q-source and K/V-source
        + (E * E + 2 * E * E + E * Cp) * itemsize_in
        + (E + 2 * E + Cp) * 4
        + B * S * Cp * jnp.dtype(x.dtype).itemsize)

    out_p = pl.pallas_call(
        kernel,
        out_shape=jax.ShapeDtypeStruct((B, S, Cp), x.dtype),
        grid_spec=pltpu.PrefetchScalarGridSpec(
            num_scalar_prefetch=0,
            grid=grid,
            in_specs=[
                pl.BlockSpec((Bb, Tq, E), lambda b, qi, ki: (b, qi, 0)),   # x (queries)
                pl.BlockSpec((Bb, Tk, E), lambda b, qi, ki: (b, ki, 0)),   # x (keys/values)
                pl.BlockSpec((E, E),      lambda b, qi, ki: (0, 0)),       # Wq
                pl.BlockSpec((1, E),      lambda b, qi, ki: (0, 0)),       # bq
                pl.BlockSpec((E, 2 * E),  lambda b, qi, ki: (0, 0)),       # W_kv (fused)
                pl.BlockSpec((1, 2 * E),  lambda b, qi, ki: (0, 0)),       # b_kv (fused)
                pl.BlockSpec((E, Cp),     lambda b, qi, ki: (0, 0)),       # Wo (padded)
                pl.BlockSpec((1, Cp),     lambda b, qi, ki: (0, 0)),       # bo (padded)
            ],
            out_specs=pl.BlockSpec((Bb, Tq, Cp), lambda b, qi, ki: (b, qi, 0)),
            scratch_shapes=[
                pltpu.VMEM((Bb, Tq, 1), jnp.float32),   # running max m
                pltpu.VMEM((Bb, Tq, 1), jnp.float32),   # running sum l
                pltpu.VMEM((Bb, Tq, E), jnp.float32),   # output accumulator
            ],
        ),
        compiler_params=pltpu.CompilerParams(
            dimension_semantics=("parallel", "parallel", "arbitrary"),
            vmem_limit_bytes=48 * 1024 * 1024,
        ),
        cost_estimate=pl.CostEstimate(
            flops=flops,
            transcendentals=transcendentals,
            bytes_accessed=bytes_accessed,
        ),
    )(xc, xc, wq_t, bq2, wkv, bkv, wo_p, bo_p)

    return out_p[:, :, :C]


def _reference(x, wq, bq, wk, bk, wv, bv, wo, bo):
    E = x.shape[-1]
    q = x @ wq.T + bq
    k = x @ wk.T + bk
    v = x @ wv.T + bv
    s = jnp.einsum('bqe,bke->bqk', q, k) * (float(E) ** -0.5)
    a = jax.nn.softmax(s, axis=-1) / jnp.sqrt(float(E))
    o = jnp.einsum('bqk,bke->bqe', a, v)
    return o @ wo.T + bo


if __name__ == "__main__":
    B, S, E, C = 2, 8, 32, 4   # batch, seq, embed_dim, num_classes

    key = jax.random.PRNGKey(0)
    ks = jax.random.split(key, 9)
    bound = 1.0 / (E ** 0.5)   # mimic nn.Linear default uniform init, deterministic

    x  = jax.random.normal(ks[0], (B, S, E), dtype=jnp.float32)
    wq = jax.random.uniform(ks[1], (E, E), minval=-bound, maxval=bound, dtype=jnp.float32)
    bq = jax.random.uniform(ks[2], (E,),   minval=-bound, maxval=bound, dtype=jnp.float32)
    wk = jax.random.uniform(ks[3], (E, E), minval=-bound, maxval=bound, dtype=jnp.float32)
    bk = jax.random.uniform(ks[4], (E,),   minval=-bound, maxval=bound, dtype=jnp.float32)
    wv = jax.random.uniform(ks[5], (E, E), minval=-bound, maxval=bound, dtype=jnp.float32)
    bv = jax.random.uniform(ks[6], (E,),   minval=-bound, maxval=bound, dtype=jnp.float32)
    wo = jax.random.uniform(ks[7], (C, E), minval=-bound, maxval=bound, dtype=jnp.float32)
    bo = jax.random.uniform(ks[8], (C,),   minval=-bound, maxval=bound, dtype=jnp.float32)

    ref = _reference(x, wq, bq, wk, bk, wv, bv, wo, bo)

    # f32 MXU-operand path (matches the module's default precision).
    out = scaled_dot_product_attention(x, wq, bq, wk, bk, wv, bv, wo, bo)
    out = jax.block_until_ready(out)
    assert out.shape == (B, S, C)
    assert jnp.allclose(out, ref, atol=2e-3, rtol=2e-3), "f32 path mismatch vs reference"

    # bf16 MXU-operand path (f32 accumulation) — the recommended mode on v6e/v7x.
    out_bf16 = scaled_dot_product_attention(x, wq, bq, wk, bk, wv, bv, wo, bo,
                                            compute_dtype=jnp.bfloat16)
    out_bf16 = jax.block_until_ready(out_bf16)
    assert out_bf16.shape == (B, S, C)
    assert jnp.allclose(out_bf16, ref, atol=5e-2, rtol=5e-2), "bf16 path mismatch vs reference"

    print("KERNEL_OK")
</pallas_src>

<mosaic_0001>
module attributes {stable_mosaic.version = 11 : i64} {
  func.func @_attn_kernel(%arg0: i32, %arg1: i32, %arg2: i32, %arg3: memref<2x8x32xf32, #tpu.memory_space<vmem>>, %arg4: memref<2x8x32xf32, #tpu.memory_space<vmem>>, %arg5: memref<32x32xf32, #tpu.memory_space<vmem>>, %arg6: memref<1x32xf32, #tpu.memory_space<vmem>>, %arg7: memref<32x64xf32, #tpu.memory_space<vmem>>, %arg8: memref<1x64xf32, #tpu.memory_space<vmem>>, %arg9: memref<32x128xf32, #tpu.memory_space<vmem>>, %arg10: memref<1x128xf32, #tpu.memory_space<vmem>>, %arg11: memref<2x8x128xf32, #tpu.memory_space<vmem>>, %arg12: memref<2x8x1xf32, #tpu.memory_space<vmem>>, %arg13: memref<2x8x1xf32, #tpu.memory_space<vmem>>, %arg14: memref<2x8x32xf32, #tpu.memory_space<vmem>>) attributes {dimension_semantics = [#tpu.dimension_semantics<parallel>, #tpu.dimension_semantics<parallel>, #tpu.dimension_semantics<arbitrary>], iteration_bounds = array<i64: 1, 1, 1>, scalar_prefetch = 0 : i64, scratch_operands = 3 : i64, tpu.core_type = #tpu.core_type<tc>, window_params = [{transform_indices = @transform_0, window_bounds = array<i64: 2, 8, 32>}, {transform_indices = @transform_1, window_bounds = array<i64: 2, 8, 32>}, {pipeline_mode = #tpu.pipeline_mode<synchronous>, transform_indices = @transform_2, window_bounds = array<i64: 32, 32>}, {pipeline_mode = #tpu.pipeline_mode<synchronous>, transform_indices = @transform_3, window_bounds = array<i64: 1, 32>}, {pipeline_mode = #tpu.pipeline_mode<synchronous>, transform_indices = @transform_4, window_bounds = array<i64: 32, 64>}, {pipeline_mode = #tpu.pipeline_mode<synchronous>, transform_indices = @transform_5, window_bounds = array<i64: 1, 64>}, {pipeline_mode = #tpu.pipeline_mode<synchronous>, transform_indices = @transform_6, window_bounds = array<i64: 32, 128>}, {pipeline_mode = #tpu.pipeline_mode<synchronous>, transform_indices = @transform_7, window_bounds = array<i64: 1, 128>}, {transform_indices = @transform_8, window_bounds = array<i64: 2, 8, 128>}]} {
    %c0_i32 = arith.constant 0 : i32
    %0 = arith.cmpi eq, %arg2, %c0_i32 : i32
    %1 = arith.extui %0 : i1 to i32
    %c0_i32_0 = arith.constant 0 : i32
    %2 = arith.cmpi ne, %1, %c0_i32_0 : i32
    scf.if %2 {
      %cst_40 = arith.constant 0xFF800000 : f32
      %47 = vector.broadcast %cst_40 : f32 to vector<2x8x1xf32>
      %c0_41 = arith.constant 0 : index
      %c0_42 = arith.constant 0 : index
      %c0_43 = arith.constant 0 : index
      %48 = vector.load %arg12[%c0_41, %c0_42, %c0_43] : memref<2x8x1xf32, #tpu.memory_space<vmem>>, vector<2x8x1xf32>
      tpu.vector_store %arg12[%c0_41, %c0_42, %c0_43], %47 {strides = array<i32>} : memref<2x8x1xf32, #tpu.memory_space<vmem>>, vector<2x8x1xf32>,
      %cst_44 = arith.constant 0.000000e+00 : f32
      %49 = vector.broadcast %cst_44 : f32 to vector<2x8x1xf32>
      %c0_45 = arith.constant 0 : index
      %c0_46 = arith.constant 0 : index
      %c0_47 = arith.constant 0 : index
      %50 = vector.load %arg13[%c0_45, %c0_46, %c0_47] : memref<2x8x1xf32, #tpu.memory_space<vmem>>, vector<2x8x1xf32>
      tpu.vector_store %arg13[%c0_45, %c0_46, %c0_47], %49 {strides = array<i32>} : memref<2x8x1xf32, #tpu.memory_space<vmem>>, vector<2x8x1xf32>,
      %cst_48 = arith.constant 0.000000e+00 : f32
      %51 = vector.broadcast %cst_48 : f32 to vector<2x8x32xf32>
      %c0_49 = arith.constant 0 : index
      %c0_50 = arith.constant 0 : index
      %c0_51 = arith.constant 0 : index
      %52 = vector.load %arg14[%c0_49, %c0_50, %c0_51] : memref<2x8x32xf32, #tpu.memory_space<vmem>>, vector<2x8x32xf32>
      tpu.vector_store %arg14[%c0_49, %c0_50, %c0_51], %51 {strides = array<i32>} : memref<2x8x32xf32, #tpu.memory_space<vmem>>, vector<2x8x32xf32>,
    } else {
    }
    %c0 = arith.constant 0 : index
    %c0_1 = arith.constant 0 : index
    %c0_2 = arith.constant 0 : index
    %3 = vector.load %arg3[%c0, %c0_1, %c0_2] : memref<2x8x32xf32, #tpu.memory_space<vmem>>, vector<2x8x32xf32>
    %c0_3 = arith.constant 0 : index
    %c0_4 = arith.constant 0 : index
    %c0_5 = arith.constant 0 : index
    %4 = vector.load %arg4[%c0_3, %c0_4, %c0_5] : memref<2x8x32xf32, #tpu.memory_space<vmem>>, vector<2x8x32xf32>
    %c0_6 = arith.constant 0 : index
    %c0_7 = arith.constant 0 : index
    %5 = vector.load %arg5[%c0_6, %c0_7] : memref<32x32xf32, #tpu.memory_space<vmem>>, vector<32x32xf32>
    %cst = arith.constant dense<0.000000e+00> : vector<2x8x32xf32>
    %6 = tpu.matmul %3, %5, %cst {dimension_numbers = #tpu.dot_dimension_numbers<[2], [0], [0, 1], [1], [0, 0, 0, 1, 1, 1], [], []>} : vector<2x8x32xf32>, vector<32x32xf32>, vector<2x8x32xf32> -> vector<2x8x32xf32>
    %c0_8 = arith.constant 0 : index
    %c0_9 = arith.constant 0 : index
    %7 = vector.load %arg6[%c0_8, %c0_9] : memref<1x32xf32, #tpu.memory_space<vmem>>, vector<1x32xf32>
    %8 = vector.shape_cast %7 : vector<1x32xf32> to vector<1x1x32xf32>
    %9 = vector.broadcast %8 : vector<1x1x32xf32> to vector<2x8x32xf32>
    %10 = arith.addf %6, %9 : vector<2x8x32xf32>
    %c0_10 = arith.constant 0 : index
    %c0_11 = arith.constant 0 : index
    %11 = vector.load %arg7[%c0_10, %c0_11] : memref<32x64xf32, #tpu.memory_space<vmem>>, vector<32x64xf32>
    %cst_12 = arith.constant dense<0.000000e+00> : vector<2x8x64xf32>
    %12 = tpu.matmul %4, %11, %cst_12 {dimension_numbers = #tpu.dot_dimension_numbers<[2], [0], [0, 1], [1], [0, 0, 0, 1, 1, 1], [], []>} : vector<2x8x32xf32>, vector<32x64xf32>, vector<2x8x64xf32> -> vector<2x8x64xf32>
    %c0_13 = arith.constant 0 : index
    %c0_14 = arith.constant 0 : index
    %13 = vector.load %arg8[%c0_13, %c0_14] : memref<1x64xf32, #tpu.memory_space<vmem>>, vector<1x64xf32>
    %14 = vector.shape_cast %13 : vector<1x64xf32> to vector<1x1x64xf32>
    %15 = vector.broadcast %14 : vector<1x1x64xf32> to vector<2x8x64xf32>
    %16 = arith.addf %12, %15 : vector<2x8x64xf32>
    %17 = vector.extract_strided_slice %16 {offsets = [0, 0, 0], sizes = [2, 8, 32], strides = [1, 1, 1]} : vector<2x8x64xf32> to vector<2x8x32xf32>
    %18 = vector.extract_strided_slice %16 {offsets = [0, 0, 32], sizes = [2, 8, 32], strides = [1, 1, 1]} : vector<2x8x64xf32> to vector<2x8x32xf32>
    %cst_15 = arith.constant dense<0.000000e+00> : vector<2x8x8xf32>
    %19 = tpu.matmul %10, %17, %cst_15 {dimension_numbers = #tpu.dot_dimension_numbers<[2], [2], [1], [1], [0, 0, 0, 1, 1, 1], [0], [0]>} : vector<2x8x32xf32>, vector<2x8x32xf32>, vector<2x8x8xf32> -> vector<2x8x8xf32>
    %cst_16 = arith.constant 0.176776692 : f32
    %20 = vector.broadcast %cst_16 : f32 to vector<2x8x8xf32>
    %21 = arith.mulf %19, %20 : vector<2x8x8xf32>
    %c0_17 = arith.constant 0 : index
    %c0_18 = arith.constant 0 : index
    %c0_19 = arith.constant 0 : index
    %22 = vector.load %arg12[%c0_17, %c0_18, %c0_19] : memref<2x8x1xf32, #tpu.memory_space<vmem>>, vector<2x8x1xf32>
    %cst_20 = arith.constant dense<0xFF800000> : vector<2x8xf32>
    %23 = vector.multi_reduction <maximumf>, %21, %cst_20 [2] : vector<2x8x8xf32> to vector<2x8xf32>
    %24 = vector.shape_cast %23 : vector<2x8xf32> to vector<2x8x1xf32>
    %25 = arith.maximumf %22, %24 : vector<2x8x1xf32>
    %26 = arith.subf %22, %25 : vector<2x8x1xf32>
    %27 = math.exp %26 : vector<2x8x1xf32>
    %28 = vector.broadcast %25 : vector<2x8x1xf32> to vector<2x8x8xf32>
    %29 = arith.subf %21, %28 : vector<2x8x8xf32>
    %30 = math.exp %29 : vector<2x8x8xf32>
    %c0_21 = arith.constant 0 : index
    %c0_22 = arith.constant 0 : index
    %c0_23 = arith.constant 0 : index
    %31 = vector.load %arg13[%c0_21, %c0_22, %c0_23] : memref<2x8x1xf32, #tpu.memory_space<vmem>>, vector<2x8x1xf32>
    %32 = arith.mulf %27, %31 : vector<2x8x1xf32>
    %cst_24 = arith.constant dense<0.000000e+00> : vector<2x8xf32>
    %33 = vector.multi_reduction <add>, %30, %cst_24 [2] : vector<2x8x8xf32> to vector<2x8xf32>
    %34 = vector.shape_cast %33 : vector<2x8xf32> to vector<2x8x1xf32>
    %35 = arith.addf %32, %34 : vector<2x8x1xf32>
    %c0_25 = arith.constant 0 : index
    %c0_26 = arith.constant 0 : index
    %c0_27 = arith.constant 0 : index
    %36 = vector.load %arg13[%c0_25, %c0_26, %c0_27] : memref<2x8x1xf32, #tpu.memory_space<vmem>>, vector<2x8x1xf32>
    tpu.vector_store %arg13[%c0_25, %c0_26, %c0_27], %35 {strides = array<i32>} : memref<2x8x1xf32, #tpu.memory_space<vmem>>, vector<2x8x1xf32>,
    %cst_28 = arith.constant dense<0.000000e+00> : vector<2x8x32xf32>
    %37 = tpu.matmul %30, %18, %cst_28 {dimension_numbers = #tpu.dot_dimension_numbers<[2], [1], [1], [2], [0, 0, 0, 1, 1, 2], [0], [0]>} : vector<2x8x8xf32>, vector<2x8x32xf32>, vector<2x8x32xf32> -> vector<2x8x32xf32>
    %c0_29 = arith.constant 0 : index
    %c0_30 = arith.constant 0 : index
    %c0_31 = arith.constant 0 : index
    %38 = vector.load %arg14[%c0_29, %c0_30, %c0_31] : memref<2x8x32xf32, #tpu.memory_space<vmem>>, vector<2x8x32xf32>
    %39 = vector.broadcast %27 : vector<2x8x1xf32> to vector<2x8x32xf32>
    %40 = arith.mulf %39, %38 : vector<2x8x32xf32>
    %41 = arith.addf %40, %37 : vector<2x8x32xf32>
    %c0_32 = arith.constant 0 : index
    %c0_33 = arith.constant 0 : index
    %c0_34 = arith.constant 0 : index
    %42 = vector.load %arg14[%c0_32, %c0_33, %c0_34] : memref<2x8x32xf32, #tpu.memory_space<vmem>>, vector<2x8x32xf32>
    tpu.vector_store %arg14[%c0_32, %c0_33, %c0_34], %41 {strides = array<i32>} : memref<2x8x32xf32, #tpu.memory_space<vmem>>, vector<2x8x32xf32>,
    %c0_35 = arith.constant 0 : index
    %c0_36 = arith.constant 0 : index
    %c0_37 = arith.constant 0 : index
    %43 = vector.load %arg12[%c0_35, %c0_36, %c0_37] : memref<2x8x1xf32, #tpu.memory_space<vmem>>, vector<2x8x1xf32>
    tpu.vector_store %arg12[%c0_35, %c0_36, %c0_37], %25 {strides = array<i32>} : memref<2x8x1xf32, #tpu.memory_space<vmem>>, vector<2x8x1xf32>,
    %c0_i32_38 = arith.constant 0 : i32
    %44 = arith.cmpi eq, %arg2, %c0_i32_38 : i32
    %45 = arith.extui %44 : i1 to i32
    %c0_i32_39 = arith.constant 0 : i32
    %46 = arith.cmpi ne, %45, %c0_i32_39 : i32
    scf.if %46 {
      %c0_40 = arith.constant 0 : index
      %c0_41 = arith.constant 0 : index
      %c0_42 = arith.constant 0 : index
      %47 = vector.load %arg14[%c0_40, %c0_41, %c0_42] : memref<2x8x32xf32, #tpu.memory_space<vmem>>, vector<2x8x32xf32>
      %c0_43 = arith.constant 0 : index
      %c0_44 = arith.constant 0 : index
      %c0_45 = arith.constant 0 : index
      %48 = vector.load %arg13[%c0_43, %c0_44, %c0_45] : memref<2x8x1xf32, #tpu.memory_space<vmem>>, vector<2x8x1xf32>
      %49 = tpu.reciprocal %48 {approx = true} : vector<2x8x1xf32> -> vector<2x8x1xf32>
      %50 = vector.broadcast %49 : vector<2x8x1xf32> to vector<2x8x32xf32>
      %51 = arith.mulf %47, %50 : vector<2x8x32xf32>
      %c0_46 = arith.constant 0 : index
      %c0_47 = arith.constant 0 : index
      %52 = vector.load %arg9[%c0_46, %c0_47] : memref<32x128xf32, #tpu.memory_space<vmem>>, vector<32x128xf32>
      %cst_48 = arith.constant dense<0.000000e+00> : vector<2x8x128xf32>
      %53 = tpu.matmul %51, %52, %cst_48 {dimension_numbers = #tpu.dot_dimension_numbers<[2], [0], [0, 1], [1], [0, 0, 0, 1, 1, 1], [], []>} : vector<2x8x32xf32>, vector<32x128xf32>, vector<2x8x128xf32> -> vector<2x8x128xf32>
      %c0_49 = arith.constant 0 : index
      %c0_50 = arith.constant 0 : index
      %54 = vector.load %arg10[%c0_49, %c0_50] : memref<1x128xf32, #tpu.memory_space<vmem>>, vector<1x128xf32>
      %55 = vector.shape_cast %54 : vector<1x128xf32> to vector<1x1x128xf32>
      %56 = vector.broadcast %55 : vector<1x1x128xf32> to vector<2x8x128xf32>
      %57 = arith.addf %53, %56 : vector<2x8x128xf32>
      %c0_51 = arith.constant 0 : index
      %c0_52 = arith.constant 0 : index
      %c0_53 = arith.constant 0 : index
      %58 = vector.load %arg11[%c0_51, %c0_52, %c0_53] : memref<2x8x128xf32, #tpu.memory_space<vmem>>, vector<2x8x128xf32>
      tpu.vector_store %arg11[%c0_51, %c0_52, %c0_53], %57 {strides = array<i32>} : memref<2x8x128xf32, #tpu.memory_space<vmem>>, vector<2x8x128xf32>,
    } else {
    }
    return
  }
  func.func @transform_0(%arg0: i32, %arg1: i32, %arg2: i32) -> (i32, i32, i32) {
    %c0_i32 = arith.constant 0 : i32
    %c0_i32_0 = arith.constant 0 : i32
    return %arg0, %arg1, %c0_i32 : i32, i32, i32
  }
  func.func @transform_1(%arg0: i32, %arg1: i32, %arg2: i32) -> (i32, i32, i32) {
    %c0_i32 = arith.constant 0 : i32
    %c0_i32_0 = arith.constant 0 : i32
    return %arg0, %arg2, %c0_i32 : i32, i32, i32
  }
  func.func @transform_2(%arg0: i32, %arg1: i32, %arg2: i32) -> (i32, i32) {
    %c0_i32 = arith.constant 0 : i32
    %c0_i32_0 = arith.constant 0 : i32
    %c0_i32_1 = arith.constant 0 : i32
    return %c0_i32, %c0_i32_0 : i32, i32
  }
  func.func @transform_3(%arg0: i32, %arg1: i32, %arg2: i32) -> (i32, i32) {
    %c0_i32 = arith.constant 0 : i32
    %c0_i32_0 = arith.constant 0 : i32
    %c0_i32_1 = arith.constant 0 : i32
    return %c0_i32, %c0_i32_0 : i32, i32
  }
  func.func @transform_4(%arg0: i32, %arg1: i32, %arg2: i32) -> (i32, i32) {
    %c0_i32 = arith.constant 0 : i32
    %c0_i32_0 = arith.constant 0 : i32
    %c0_i32_1 = arith.constant 0 : i32
    return %c0_i32, %c0_i32_0 : i32, i32
  }
  func.func @transform_5(%arg0: i32, %arg1: i32, %arg2: i32) -> (i32, i32) {
    %c0_i32 = arith.constant 0 : i32
    %c0_i32_0 = arith.constant 0 : i32
    %c0_i32_1 = arith.constant 0 : i32
    return %c0_i32, %c0_i32_0 : i32, i32
  }
  func.func @transform_6(%arg0: i32, %arg1: i32, %arg2: i32) -> (i32, i32) {
    %c0_i32 = arith.constant 0 : i32
    %c0_i32_0 = arith.constant 0 : i32
    %c0_i32_1 = arith.constant 0 : i32
    return %c0_i32, %c0_i32_0 : i32, i32
  }
  func.func @transform_7(%arg0: i32, %arg1: i32, %arg2: i32) -> (i32, i32) {
    %c0_i32 = arith.constant 0 : i32
    %c0_i32_0 = arith.constant 0 : i32
    %c0_i32_1 = arith.constant 0 : i32
    return %c0_i32, %c0_i32_0 : i32, i32
  }
  func.func @transform_8(%arg0: i32, %arg1: i32, %arg2: i32) -> (i32, i32, i32) {
    %c0_i32 = arith.constant 0 : i32
    %c0_i32_0 = arith.constant 0 : i32
    return %arg0, %arg1, %c0_i32 : i32, i32, i32
  }
}

</mosaic_0001>

<bundles_post_ra>
// kernel: tpu_custom_call.1
= control target key start
LH: loop header
LB: loop body
LE: loop exit
PB: predicated region body
PF: predicated region fallthrough
CT: control target
= control target key end

     0   :  { %13 = vsyncpa [#allocation6], 0  ;;  %s1295_s0 = inlined_call_operand.hbm [shape: f32[2,8,32], index: 0, kind: input, shape index: {}]   ;;  %s1296_s1 = inlined_call_operand.hbm [shape: f32[2,8,32], index: 1, kind: input, shape index: {}]   ;;  %s1297_s2 = inlined_call_operand.hbm [shape: f32[32,32], index: 2, kind: input, shape index: {}]   ;;  %s1298_s3 = inlined_call_operand.vmem [shape: f32[1,32], index: 3, kind: input, shape index: {}]   ;;  %s1299_s4 = inlined_call_operand.hbm [shape: f32[32,64], index: 4, kind: input, shape index: {}]   ;;  %s1300_s5 = inlined_call_operand.vmem [shape: f32[1,64], index: 5, kind: input, shape index: {}]   ;;  %s1301_s6 = inlined_call_operand.hbm [shape: f32[32,128], index: 6, kind: input, shape index: {}]   ;;  %s1302_s7 = inlined_call_operand.vmem [shape: f32[1,128], index: 7, kind: input, shape index: {}]   ;;  %s1303_s8 = inlined_call_operand.hbm [shape: f32[2,8,128], index: 8, kind: output, shape index: {}]  }
   0x1   :  { %14 = vsyncpa [#allocation9], 0 }
   0x2   :  { %15 = vsyncpa [#allocation12], 0 }
   0x3   :  { %16 = vsyncpa [#allocation7], 0  ;;  %s1092_s27 = smov [#allocation8]   ;;  %s1093_s29 = smov [#allocation11]  }
   0x4   :  { %s34_s28 = sshll.u32 %s1092_s27, 4  ;;  %s60_s30 = sshll.u32 %s1093_s29, 4  ;;  %s35_s28 = int_to_ptr.vmem [resolvable:$true] %s34_s28  ;;  %s1150_s30 = int_to_ptr.vmem [resolvable:$true] %s60_s30 }
   0x5   :  { %s952_s11 = scalar_lea.hbm %s1296_s1, 256 }
   0x6   :  { %p953_p0 = scmp.ne.s32.totalorder %s1296_s1, %s952_s11  ;;  %p956_p1 = scmp.lt.u32.totalorder %s952_s11, %s1296_s1 }
   0x8   :  { %p958_p2 = pnand %p956_p1, %p953_p0 }
   0xa   :  { %961 = shalt.err (!%p958_p2)
}
   0xb   :  { %s962_s16 = scalar_lea.vmem %s35_s28, 256  ;;  %p967_p4 = scmp.lt.s32.totalorder %s35_s28, %s35_s28 }
   0xc   :  { %p963_p3 = scmp.ne.s32.totalorder %s35_s28, %s962_s16  ;;  %p968_p5 = scmp.lt.s32.totalorder %s962_s16, %s962_s16 }
   0xe   :  { %p969_p6 = por %p968_p5, %p967_p4 }
  0x10   :  { %p970_p7 = pnand %p969_p6, %p963_p3 }
  0x12   :  { %973 = shalt.err (!%p970_p7)
}
  0x13   :  { %s1094_s17 = smov 128   ;;  %s1095_s18 = smov 8  }
  0x14   :  { %40 = dma.hbm_to_vmem [thread:$0]  %s1296_s1, 256, %s35_s28, [#allocation9], %s1094_s17, %s1094_s17, %s1095_s18  }
  0x15   :  { %s974_s23 = scalar_lea.hbm %s1299_s4, 512 }
  0x16   :  { %p975_p8 = scmp.ne.s32.totalorder %s1299_s4, %s974_s23  ;;  %p978_p9 = scmp.lt.u32.totalorder %s974_s23, %s1299_s4 }
  0x18   :  { %p980_p10 = pnand %p978_p9, %p975_p8 }
  0x1a   :  { %983 = shalt.err (!%p980_p10)
}
  0x1b   :  { %s984_s29 = scalar_lea.vmem %s1150_s30, 512  ;;  %p989_p12 = scmp.lt.s32.totalorder %s1150_s30, %s1150_s30 }
  0x1c   :  { %p985_p11 = scmp.ne.s32.totalorder %s1150_s30, %s984_s29  ;;  %p990_p13 = scmp.lt.s32.totalorder %s984_s29, %s984_s29 }
  0x1e   :  { %p991_p0 = por %p990_p13, %p989_p12 }
  0x20   :  { %p992_p1 = pnand %p991_p0, %p985_p11 }
  0x22   :  { %995 = shalt.err (!%p992_p1)
}
  0x23   :  { %66 = dma.hbm_to_vmem [thread:$0]  %s1299_s4, 512, %s1150_s30, [#allocation12], %s1094_s17, %s1094_s17, %s1095_s18  }
  0x24   :  { %s1096_s9 = smov [#allocation5]   ;;  %s1097_s11 = smov [#allocation10]  }
  0x25   :  { %s22_s10 = sshll.u32 %s1096_s9, 4  ;;  %s46_s12 = sshll.u32 %s1097_s11, 4  ;;  %s23_s10 = int_to_ptr.vmem [resolvable:$true] %s22_s10  ;;  %s1187_s12 = int_to_ptr.vmem [resolvable:$true] %s46_s12 }
  0x26   :  { %s996_s15 = scalar_lea.hbm %s1295_s0, 256 }
  0x27   :  { %p997_p2 = scmp.ne.s32.totalorder %s1295_s0, %s996_s15  ;;  %p1000_p3 = scmp.lt.u32.totalorder %s996_s15, %s1295_s0 }
  0x29   :  { %p1002_p4 = pnand %p1000_p3, %p997_p2 }
  0x2b   :  { %1005 = shalt.err (!%p1002_p4)
}
  0x2c   :  { %s1006_s4 = scalar_lea.vmem %s23_s10, 256  ;;  %p1011_p6 = scmp.lt.s32.totalorder %s23_s10, %s23_s10 }
  0x2d   :  { %p1007_p5 = scmp.ne.s32.totalorder %s23_s10, %s1006_s4  ;;  %p1012_p7 = scmp.lt.s32.totalorder %s1006_s4, %s1006_s4 }
  0x2f   :  { %p1013_p8 = por %p1012_p7, %p1011_p6 }
  0x31   :  { %p1014_p9 = pnand %p1013_p8, %p1007_p5 }
  0x33   :  { %1017 = shalt.err (!%p1014_p9)
}
  0x34   :  { %28 = dma.hbm_to_vmem [thread:$0]  %s1295_s0, 256, %s23_s10, [#allocation6], %s1094_s17, %s1094_s17, %s1095_s18  }
  0x35   :  { %s1018_s25 = scalar_lea.hbm %s1297_s2, 512 }
  0x36   :  { %p1019_p10 = scmp.ne.s32.totalorder %s1297_s2, %s1018_s25  ;;  %p1022_p11 = scmp.lt.u32.totalorder %s1018_s25, %s1297_s2 }
  0x38   :  { %p1024_p12 = pnand %p1022_p11, %p1019_p10 }
  0x3a   :  { %1027 = shalt.err (!%p1024_p12)
}
  0x3b   :  { %s1028_s28 = scalar_lea.vmem %s1187_s12, 512  ;;  %p1033_p0 = scmp.lt.s32.totalorder %s1187_s12, %s1187_s12 }
  0x3c   :  { %p1029_p13 = scmp.ne.s32.totalorder %s1187_s12, %s1028_s28  ;;  %p1034_p1 = scmp.lt.s32.totalorder %s1028_s28, %s1028_s28 }
  0x3e   :  { %p1035_p2 = por %p1034_p1, %p1033_p0 }
  0x40   :  { %p1036_p3 = pnand %p1035_p2, %p1029_p13 }
  0x42   :  { %1039 = shalt.err (!%p1036_p3)
}
  0x43   :  { %52 = dma.hbm_to_vmem [thread:$0]  %s1297_s2, 512, %s1187_s12, [#allocation9], %s1094_s17, %s1094_s17, %s1095_s18  }
  0x44   :  { %s1098_s10 = smov [#allocation13]   ;;  %s1040_s15 = scalar_lea.hbm %s1301_s6, 512 }
  0x45   :  { %s74_s11 = sshll.u32 %s1098_s10, 4  ;;  %p1041_p4 = scmp.ne.s32.totalorder %s1301_s6, %s1040_s15  ;;  %s75_s11 = int_to_ptr.vmem [resolvable:$true] %s74_s11 }
  0x46   :  { %p1044_p5 = scmp.lt.u32.totalorder %s1040_s15, %s1301_s6 }
  0x48   :  { %p1046_p6 = pnand %p1044_p5, %p1041_p4 }
  0x4a   :  { %1049 = shalt.err (!%p1046_p6)
}
  0x4b   :  { %s1050_s4 = scalar_lea.vmem %s75_s11, 512  ;;  %p1055_p8 = scmp.lt.s32.totalorder %s75_s11, %s75_s11 }
  0x4c   :  { %p1051_p7 = scmp.ne.s32.totalorder %s75_s11, %s1050_s4  ;;  %p1056_p9 = scmp.lt.s32.totalorder %s1050_s4, %s1050_s4 }
  0x4e   :  { %p1057_p10 = por %p1056_p9, %p1055_p8 }
  0x50   :  { %p1058_p11 = pnand %p1057_p10, %p1051_p7 }
  0x52   :  { %1061 = shalt.err (!%p1058_p11)
}
  0x53   :  { %80 = dma.hbm_to_vmem [thread:$0]  %s1301_s6, 512, %s75_s11, [#allocation12], %s1094_s17, %s1094_s17, %s1095_s18  }
  0x54   :  { %1084 = dma.done.wait [#allocation6], 256  }
  0x55   :  { %1085 = vsyncadd [#allocation6], 4294967040 }
  0x56   :  { %1086 = dma.done.wait [#allocation9], 768  }
  0x57   :  { %1087 = vsyncadd [#allocation9], 4294966528 }
  0x58   :  { %1088 = dma.done.wait [#allocation12], 1024  }
  0x59   :  { %1089 = vsyncadd [#allocation12], 4294966272  ;;  %v207_v0 = vld [vmem:[#allocation11] sm:$0xff]  ;;  %v208_v1 = vld [vmem:[#allocation11 + $0x8] sm:$0xff]  ;;  %vm107_vm0 = vcmask 261120   ;;  %v1099_v16 = vmov 0.0  }
  0x5a   :  { %v114_v2 = vld [vmem:[#allocation10] sm:$0xff]  ;;  %v909_v3 = vpack.c.bf16 %v208_v1, %v207_v0  ;;  %v115_v4 = vld [vmem:[#allocation10 + $0x8] sm:$0xff]  ;;  %v209_v5 = vld [vmem:[#allocation11 + $0x10] sm:$0xff]  ;;  %108 = vst.msk [vmem:[#allocation4] sm:$0xff] %vm107_vm0, %v1099_v16  ;;  %vm1100_vm1 = vmmov 0   ;;  %vm102_vm2 = vcmask 7168  }
  0x5b   :  { %v210_v6 = vld [vmem:[#allocation11 + $0x18] sm:$0xff]  ;;  %v901_v7 = vpack.c.bf16 %v115_v4, %v114_v2  ;;  %v116_v9 = vld [vmem:[#allocation10 + $0x10] sm:$0xff]  ;;  %v110_v13 = vld [vmem:[#allocation5] sm:$0xff]  ;;  %109 = vst.msk [vmem:[#allocation4 + $0x8] sm:$0xff] %vm107_vm0, %v1099_v16  ;;  %v1101_v27 = vmov -inf   ;;  %vm455_vm3 = vcmask 64512  }
  0x5c   :  { %v913_v8 = vpack.c.bf16 %v210_v6, %v209_v5  ;;  %v117_v10 = vld [vmem:[#allocation10 + $0x18] sm:$0xff]  ;;  %v112_v11 = vld [vmem:[#allocation8] sm:$0xff]  ;;  %910 = vmatprep.subr.bf16.mxu1 %v909_v3  ;;  %856 = vmatprep.mubr.msk.f32.mxu0 %vm107_vm0, %v110_v13  ;;  %v111_v15 = vld [vmem:[#allocation5 + $0x8] sm:$0xff]  ;;  %103 = vst.msk [vmem:[#allocation2] sm:$0xff] %vm102_vm2, %v1101_v27  ;;  %v1102_v36 = vmov 0   ;;  %s1104_s25 = smov [#allocation14]  }
  0x5d   :  { %v905_v12 = vpack.c.bf16 %v117_v10, %v116_v9  ;;  %867 = vmatprep.mubr.msk.f32.mxu1 %vm107_vm0, %v112_v11  ;;  %912 = vmatpush3.bf16.msra.mxu1 %v909_v3  ;;  %v113_v14 = vld [vmem:[#allocation8 + $0x8] sm:$0xff]  ;;  %v810_v17 = vld [vmem:[%s1300_s5] ss:$0 sm:$0xff]  ;;  %104 = vst.msk [vmem:[#allocation2 + $0x8] sm:$0xff] %vm102_vm2, %v1101_v27  ;;  %105 = vst.msk [vmem:[#allocation3] sm:$0xff] %vm102_vm2, %v1099_v16  ;;  %s793_s26 = sshll.u32 %s1104_s25, 4  ;;  %s794_s26 = int_to_ptr.vmem [resolvable:$true] %s793_s26 }
  0x5e   :  { %902 = vmatprep.subr.bf16.mxu0 %v901_v7  ;;  %914 = vmatprep.subr.bf16.mxu1 %v913_v8  ;;  %v807_v19 = vld [vmem:[%s1298_s3] ss:$0 sm:$0xff]  ;;  %106 = vst.msk [vmem:[#allocation3 + $0x8] sm:$0xff] %vm102_vm2, %v1099_v16  ;;  %s1103_s3 = smov 96   ;;  %v694_v61 = vld [vmem:[#allocation13] sm:$0xff]  ;;  %v695_v62 = vld [vmem:[#allocation13 + $0x8] sm:$0xff]  ;;  %p1067_p13 = scmp.lt.s32.totalorder %s794_s26, %s794_s26 }
  0x5f   :  { %904 = vmatpush3.bf16.msra.mxu0 %v901_v7  ;;  %938 = vset.pattern.permute.xlu1 %v1102_v36  ;;  %v917_v63 = vpack.c.bf16 %v695_v62, %v694_v61  ;;  %v696_v11 = vld [vmem:[#allocation13 + $0x10] sm:$0xff]  ;;  %s1062_s27 = scalar_lea.vmem %s794_s26, 256 }
  0x60   :  { %906 = vmatprep.subr.bf16.mxu0 %v905_v12  ;;  %939 = vset.pattern.permute.xlu0 %v1102_v36  ;;  %p1063_p12 = scmp.ne.s32.totalorder %s794_s26, %s1062_s27  ;;  %p1068_p0 = scmp.lt.s32.totalorder %s1062_s27, %s1062_s27 }
  0x61   :  { %916 = vmatpush3.bf16.msra.mxu1 %v913_v8 }
  0x62   :  { %870 = vmatprep.subr.mxu1 %v1099_v16  ;;  %p1069_p1 = por %p1068_p0, %p1067_p13 }
  0x63   :  { %908 = vmatpush3.bf16.msra.mxu0 %v905_v12  ;;  %v453_v37 = vld [vmem:[#allocation2] sm:$0xff]  ;;  %v697_v12 = vld [vmem:[#allocation13 + $0x18] sm:$0xff] }
  0x64   :  { %868 = vmatmul.mubr.msk.f32.vlgmr.msra.gmra.mrb[0].mxu1 %vm107_vm0, %v113_v14  ;;  %880 = vmatprep.subr.mxu0 %v1099_v16  ;;  %v454_v40 = vld [vmem:[#allocation2 + $0x8] sm:$0xff]  ;;  %v486_v0 = vld [vmem:[#allocation3] sm:$0xff]  ;;  %v921_v13 = vpack.c.bf16 %v697_v12, %v696_v11  ;;  %p1070_p2 = pnand %p1069_p1, %p1063_p12 }
  0x65   :  { %872 = vmatprep.mubr.msk.f32.mxu1 %vm1100_vm1, %v1099_v16  ;;  %v487_v3 = vld [vmem:[#allocation3 + $0x8] sm:$0xff] }
  0x66   :  { %857 = vmatmul.mubr.msk.f32.vlgmr.msra.gmra.mrb[0].mxu0 %vm107_vm0, %v111_v15  ;;  %v653_v15 = vld [vmem:[#allocation4] sm:$0xff] }
  0x67   :  { %882 = vmatprep.mubr.msk.f32.mxu0 %vm1100_vm1, %v1099_v16 }
 0x137   :  { %v869_v18 = vpop.f32.mrb[0].mxu1 }
 0x138   :  { %v290_v20 = vpop.f32.mrb[1].mxu1  ;;  %v296_v25 = vadd.f32 %v869_v18, %v810_v17  ;;  %v654_v18 = vld [vmem:[#allocation4 + $0x8] sm:$0xff] }
 0x139   :  { %v858_v21 = vpop.f32.mrb[0].mxu0  ;;  %v291_v22 = vadd.f32 %v810_v17, %v290_v20 }
 0x13a   :  { %v198_v23 = vpop.f32.mrb[1].mxu0  ;;  %v204_v26 = vadd.f32 %v858_v21, %v807_v19 }
 0x13b   :  { %v199_v24 = vadd.f32 %v807_v19, %v198_v23  ;;  %871 = vmatpush3.xpose.msk.msra.mxu1 %vm107_vm0, %v291_v22 }
 0x13c   :  { %875 = vmatprep.subr.mxu1 %v1099_v16 }
 0x13e   :  { %873 = vmatmul.mubr.msk.f32.vlgmr.msra.gmra.mrb[2].mxu1 %vm107_vm0, %v199_v24 }
 0x13f   :  { %876 = vmatpush3.xpose.msk.msra.mxu1 %vm107_vm0, %v296_v25  ;;  %877 = vmatprep.mubr.msk.f32.mxu1 %vm1100_vm1, %v1099_v16 }
 0x140   :  { %885 = vmatprep.subr.mxu1 %v1099_v16 }
 0x142   :  { %878 = vmatmul.mubr.msk.f32.vlgmr.msra.gmra.mrb[4].mxu1 %vm107_vm0, %v204_v26 }
 0x143   :  { %887 = vmatprep.mubr.msk.f32.mxu1 %vm1100_vm1, %v1099_v16 }
 0x211   :  { %v371_v28 = vpop.f32.mrb[2].mxu1 }
 0x212   :  { %v451_v29 = vmul.f32 0.17677669, %v371_v28  ;;  %v874_v30 = vpop.f32.mrb[3].mxu1 }
 0x214   :  { %v456_v31 = vsel %vm455_vm3, %v451_v29, -inf }
 0x215   :  { %457 = vmax.xlane.f32.xlu0 %v456_v31  ;;  %v447_v32 = vpop.f32.mrb[4].mxu1 }
 0x216   :  { %v452_v33 = vmul.f32 0.17677669, %v447_v32  ;;  %v879_v34 = vpop.f32.mrb[5].mxu1 }
 0x218   :  { %v459_v35 = vsel %vm455_vm3, %v452_v33, -inf }
 0x219   :  { %460 = vmax.xlane.f32.xlu0 %v459_v35 }
 0x22f   :  { %501 = vrot.lane.b32.xlu0 %v291_v22, %s1103_s3 }
 0x2a2   :  { %v458_v38 = vpop.xlane.xlu0 %457 }
 0x2a3   :  { %v462_v39 = vmax.f32 %v453_v37, %v458_v38 }
 0x2a5   :  { %v464_v41 = vsub.f32 %v453_v37, %v462_v39  ;;  %671 = vst.msk [vmem:[#allocation2] sm:$0xff] %vm102_vm2, %v462_v39  ;;  %472 = vperm.xlu1 %938, %v462_v39  }
 0x2a6   :  { %v461_v42 = vpop.xlane.xlu0 %460 }
 0x2a7   :  { %v463_v43 = vmax.f32 %v454_v40, %v461_v42  ;;  %v466_v56 = vmul.f32 1.442695, %v464_v41 }
 0x2a9   :  { %v465_v44 = vsub.f32 %v454_v40, %v463_v43  ;;  %672 = vst.msk [vmem:[#allocation2 + $0x8] sm:$0xff] %vm102_vm2, %v463_v43  ;;  %477 = vperm.xlu1 %938, %v463_v43  }
 0x2aa   :  { %v502_v45 = vpop.permute.xlu0 %501 }
 0x2ab   :  { %881 = vmatpush3.msra.mxu0 %v502_v45  ;;  %v468_v58 = vmul.f32 1.442695, %v465_v44 }
 0x2ac   :  { %918 = vmatprep.subr.bf16.mxu0 %v917_v63 }
 0x2ad   :  { %577 = vrot.lane.b32.xlu1 %v296_v25, %s1103_s3 }
 0x324   :  { %v473_v46 = vpop.permute.xlu1 %472 }
 0x325   :  { %v480_v47 = vsub.f32 %v451_v29, %v473_v46 }
 0x327   :  { %v482_v48 = vmul.f32 1.442695, %v480_v47 }
 0x328   :  { %v478_v49 = vpop.permute.xlu1 %477 }
 0x329   :  { %940 = vpow2.f32 %v482_v48  ;;  %v481_v50 = vsub.f32 %v452_v33, %v478_v49  ;;  %v819_v33 = vld [vmem:[%s1302_s7] ss:$0 sm:$0xff] }
 0x32b   :  { %v484_v51 = vmul.f32 1.442695, %v481_v50 }
 0x32c   :  { %v578_v52 = vpop.permute.xlu1 %577 }
 0x32d   :  { %942 = vpow2.f32 %v484_v51  ;;  %886 = vmatpush3.msra.mxu1 %v578_v52 }
 0x32e   :  { %944 = vpow2.f32 %v466_v56 }
 0x32f   :  { %946 = vpow2.f32 %v468_v58 }
 0x333   :  { %v941_v53 = vpop.eup %940 }
 0x334   :  { %883 = vmatmul.mubr.msk.f32.vlgmr.msra.gmra.mrb[2].mxu0 %vm455_vm3, %v941_v53  ;;  %v490_v54 = vsel %vm455_vm3, %v941_v53, 0.0 }
 0x335   :  { %491 = vadd.xlane.f32.xlu1 %v490_v54  ;;  %920 = vmatpush3.bf16.msra.mxu0 %v917_v63 }
 0x336   :  { %922 = vmatprep.subr.bf16.mxu0 %v921_v13 }
 0x337   :  { %v943_v55 = vpop.eup %942 }
 0x338   :  { %888 = vmatmul.mubr.msk.f32.vlgmr.msra.gmra.mrb[6].mxu1 %vm455_vm3, %v943_v55  ;;  %v493_v57 = vsel %vm455_vm3, %v943_v55, 0.0  ;;  %v945_v59 = vpop.eup %944 }
 0x339   :  { %494 = vadd.xlane.f32.xlu0 %v493_v57  ;;  %v947_v60 = vpop.eup %946  ;;  %v488_v1 = vmul.f32 %v945_v59, %v486_v0  ;;  %924 = vmatpush3.bf16.msra.mxu0 %v921_v13 }
 0x33a   :  { %v489_v5 = vmul.f32 %v947_v60, %v487_v3 }
 0x346   :  { %657 = vperm.xlu1 %938, %v945_v59  }
 0x34f   :  { %662 = vperm.xlu0 %939, %v947_v60  }
 0x3c2   :  { %v492_v2 = vpop.xlane.xlu1 %491 }
 0x3c3   :  { %v496_v4 = vadd.f32 %v492_v2, %v488_v1 }
 0x3c5   :  { %499 = vst.msk [vmem:[#allocation3] sm:$0xff] %vm102_vm2, %v496_v4 }
 0x3c6   :  { %v495_v6 = vpop.xlane.xlu0 %494  ;;  %v658_v16 = vpop.permute.xlu1 %657 }
 0x3c7   :  { %v497_v7 = vadd.f32 %v495_v6, %v489_v5  ;;  %v665_v17 = vmul.f32 %v658_v16, %v653_v15 }
 0x3c9   :  { %500 = vst.msk [vmem:[#allocation3 + $0x8] sm:$0xff] %vm102_vm2, %v497_v7 }
 0x3cc   :  { %v678_v8 = vld [vmem:[#allocation3] sm:$0xff] }
 0x3cd   :  { %948 = vrcp.f32 %v678_v8 }
 0x3ce   :  { %v663_v19 = vpop.permute.xlu0 %662 }
 0x3cf   :  { %v666_v23 = vmul.f32 %v663_v19, %v654_v18 }
 0x3d0   :  { %v679_v9 = vld [vmem:[#allocation3 + $0x8] sm:$0xff] }
 0x3d1   :  { %950 = vrcp.f32 %v679_v9 }
 0x3d7   :  { %v949_v10 = vpop.eup %948 }
 0x3d8   :  { %684 = vperm.xlu1 %938, %v949_v10  }
 0x3db   :  { %v951_v14 = vpop.eup %950 }
 0x3dc   :  { %689 = vperm.xlu1 %938, %v951_v14  }
 0x407   :  { %v573_v20 = vpop.f32.mrb[2].mxu0 }
 0x408   :  { %v667_v21 = vadd.f32 %v665_v17, %v573_v20  ;;  %v884_v22 = vpop.f32.mrb[3].mxu0 }
 0x40a   :  { %669 = vst.msk [vmem:[#allocation4] sm:$0xff] %vm107_vm0, %v667_v21 }
 0x40b   :  { %v649_v24 = vpop.f32.mrb[6].mxu1 }
 0x40c   :  { %v668_v25 = vadd.f32 %v666_v23, %v649_v24  ;;  %v889_v26 = vpop.f32.mrb[7].mxu1 }
 0x40e   :  { %670 = vst.msk [vmem:[#allocation4 + $0x8] sm:$0xff] %vm107_vm0, %v668_v25 }
 0x411   :  { %v676_v27 = vld [vmem:[#allocation4] sm:$0xff] }
 0x415   :  { %v677_v30 = vld [vmem:[#allocation4 + $0x8] sm:$0xff] }
 0x457   :  { %v685_v28 = vpop.permute.xlu1 %684 }
 0x458   :  { %v692_v29 = vmul.f32 %v685_v28, %v676_v27 }
 0x45a   :  { %898 = vmatprep.mubr.msk.f32.mxu0 %vm107_vm0, %v692_v29 }
 0x45b   :  { %v690_v31 = vpop.permute.xlu1 %689 }
 0x45c   :  { %v693_v32 = vmul.f32 %v690_v31, %v677_v30 }
 0x45e   :  { %899 = vmatmul.mubr.msk.f32.vlgmr.msra.gmra.mrb[4].mxu0 %vm107_vm0, %v693_v32 }
 0x531   :  { %v900_v34 = vpop.f32.mrb[4].mxu0 }
 0x532   :  { %v783_v35 = vadd.f32 %v900_v34, %v819_v33  ;;  %v777_v36 = vpop.f32.mrb[5].mxu0 }
 0x533   :  { %v778_v37 = vadd.f32 %v819_v33, %v777_v36 }
 0x534   :  { %787 = vst [vmem:[#allocation14 + $0x8] sm:$0xff] %v783_v35 }
 0x535   :  { %786 = vst [vmem:[#allocation14] sm:$0xff] %v778_v37 }
 0x536   :  { %1073 = shalt.err (!%p1070_p2)
}
 0x537   :  { %s1074_s7 = scalar_lea.hbm %s1303_s8, 256 }
 0x538   :  { %p1075_p3 = scmp.ne.s32.totalorder %s1303_s8, %s1074_s7  ;;  %p1078_p4 = scmp.lt.u32.totalorder %s1074_s7, %s1303_s8 }
 0x53a   :  { %p1080_p5 = pnand %p1078_p4, %p1075_p3 }
 0x53c   :  { %1083 = shalt.err (!%p1080_p5)
}
 0x53d   :  { %799 = dma.vmem_to_hbm [thread:$0]  %s794_s26, 256, %s1303_s8, [#allocation7], %s1094_s17, %s1094_s17, %s1095_s18  }
 0x53e   :  { %1090 = dma.done.wait [#allocation7], 256  }
 0x53f   :  { %1091 = vsyncadd [#allocation7], 4294967040 }
 0x540   :  { %803 = vsyncpa [#allocation6], 1 }
 0x541   :  { %804 = vsyncpa [#allocation9], 1 }
 0x542   :  { %805 = vsyncpa [#allocation12], 1 }
 0x543   :  { %806 = vsyncpa [#allocation7], 1 }

</bundles_post_ra>
